<compile_context>
chip_gen: v6e
topology: v6e:2x2x1
jax: 0.10.0
libtpu: 0.0.40
codegen_flags: <defaults>
</compile_context>

<pallas_src>
import functools

import jax
import jax.numpy as jnp
from jax.experimental import pallas as pl
from jax.experimental.pallas import tpu as pltpu


def _round_up(a, b):
    return ((a + b - 1) // b) * b


def cosine_margin_loss_kernel(x_ref, labels_ref, w_ref, out_ref, *, m, s, n_valid):
    i = pl.program_id(0)

    @pl.when(i == 0)
    def _init():
        out_ref[...] = jnp.zeros_like(out_ref)

    x = x_ref[...]            # (TM, D) f32
    w = w_ref[...]            # (D, C)  f32 (resident across the grid)
    labels = labels_ref[...]  # (TM, 1) i32

    # Raw matmul on the MXU with untouched operands; normalize afterwards.
    xw = jnp.dot(x, w, preferred_element_type=jnp.float32)          # (TM, C)

    eps = 1e-12
    row_inv = jax.lax.rsqrt(jnp.sum(x * x, axis=1, keepdims=True) + eps)  # (TM, 1)
    col_inv = jax.lax.rsqrt(jnp.sum(w * w, axis=0, keepdims=True) + eps)  # (1, C)
    cos = xw * row_inv * col_inv                                           # (TM, C)

    tm, n_cls = cos.shape
    class_ids = jax.lax.broadcasted_iota(jnp.int32, (tm, n_cls), 1)
    one_hot = (class_ids == labels).astype(jnp.float32)                    # (TM, C)

    # Single masked reduction: target cosine per row, reused for the target logit.
    cos_y = jnp.sum(cos * one_hot, axis=1, keepdims=True)                  # (TM, 1)

    # value = s * (cos - m * one_hot); cross-entropy per row = lse - value[label].
    value = s * cos - (s * m) * one_hot
    row_max = jnp.max(value, axis=1, keepdims=True)
    lse = jnp.log(jnp.sum(jnp.exp(value - row_max), axis=1, keepdims=True)) + row_max
    target_logit = s * (cos_y - m)                                         # (TM, 1)

    # Mask out rows that are batch padding (generated in-kernel, no extra DMA).
    row_ids = i * tm + jax.lax.broadcasted_iota(jnp.int32, (tm, 1), 0)
    valid = (row_ids < n_valid).astype(jnp.float32)

    per_row = (lse - target_logit) * valid                                 # (TM, 1)
    out_ref[...] += jnp.sum(per_row, axis=0, keepdims=True)

    @pl.when(i == pl.num_programs(0) - 1)
    def _finalize():
        out_ref[...] *= (1.0 / n_valid)


def cosine_margin_loss(x, w, labels, m=0.35, s=64.0, block_rows=512):
    """x: (N, 31) f32, w: (31, C) f32, labels: (N,) int -> scalar mean loss."""
    n, d = x.shape
    c = w.shape[1]

    tm = min(block_rows, _round_up(n, 8))      # f32 sublane multiple of 8
    n_pad = _round_up(n, tm)
    grid = n_pad // tm

    if n_pad != n:
        pad = n_pad - n
        x = jnp.pad(x, ((0, pad), (0, 0)))
        labels = jnp.pad(labels, (0, pad))     # padded rows masked in-kernel
    labels2d = labels.reshape(n_pad, 1).astype(jnp.int32)

    kernel = functools.partial(
        cosine_margin_loss_kernel, m=float(m), s=float(s), n_valid=n)

    out = pl.pallas_call(
        kernel,
        out_shape=jax.ShapeDtypeStruct((1, 1), jnp.float32),
        grid=(grid,),
        in_specs=[
            pl.BlockSpec((tm, d), lambda i: (i, 0)),   # x rows streamed
            pl.BlockSpec((tm, 1), lambda i: (i, 0)),   # labels streamed
            pl.BlockSpec((d, c), lambda i: (0, 0)),    # w resident
        ],
        out_specs=pl.BlockSpec((1, 1), lambda i: (0, 0)),  # carried accumulator
        compiler_params=pltpu.CompilerParams(
            dimension_semantics=("arbitrary",)),           # reduction axis
    )(x, labels2d, w)
    return out[0, 0]


def cosine_margin_loss_ref(x, w, labels, m=0.35, s=64.0):
    x_norm = x / jnp.linalg.norm(x, axis=1, keepdims=True)
    w_norm = w / jnp.linalg.norm(w, axis=0, keepdims=True)
    xw = x_norm @ w_norm
    one_hot = jax.nn.one_hot(labels, w.shape[1], dtype=jnp.float32)
    value = s * (xw - m * one_hot)
    lse = jax.scipy.special.logsumexp(value, axis=1)
    target = jnp.sum(value * one_hot, axis=1)
    return jnp.mean(lse - target)


if __name__ == "__main__":
    # Module hard-codes w = randn(31, num_classes), so embed dim is 31.
    EMBED_DIM = 31
    NUM_CLASSES = 16
    M, S = 0.35, 64.0

    key = jax.random.PRNGKey(0)
    k_x, k_w, k_l, k_x2, k_l2 = jax.random.split(key, 5)

    # Small shape (single grid step).
    N = 8
    x = jax.random.normal(k_x, (N, EMBED_DIM), dtype=jnp.float32)
    w = jax.random.normal(k_w, (EMBED_DIM, NUM_CLASSES), dtype=jnp.float32)
    labels = jax.random.randint(k_l, (N,), 0, NUM_CLASSES, dtype=jnp.int32)

    loss = cosine_margin_loss(x, w, labels, m=M, s=S)
    jax.block_until_ready(loss)
    ref = cosine_margin_loss_ref(x, w, labels, m=M, s=S)
    assert abs(float(loss) - float(ref)) < 1e-3 * max(1.0, abs(float(ref))), (
        float(loss), float(ref))

    # Larger batch: exercises the streamed row grid + padding/masking path.
    N2 = 1000
    x2 = jax.random.normal(k_x2, (N2, EMBED_DIM), dtype=jnp.float32)
    labels2 = jax.random.randint(k_l2, (N2,), 0, NUM_CLASSES, dtype=jnp.int32)

    loss2 = cosine_margin_loss(x2, w, labels2, m=M, s=S)
    jax.block_until_ready(loss2)
    ref2 = cosine_margin_loss_ref(x2, w, labels2, m=M, s=S)
    assert abs(float(loss2) - float(ref2)) < 1e-3 * max(1.0, abs(float(ref2))), (
        float(loss2), float(ref2))

    print("KERNEL_OK")
</pallas_src>

<mosaic_0001>
module attributes {stable_mosaic.version = 11 : i64} {
  func.func @cosine_margin_loss_kernel(%arg0: i32, %arg1: memref<8x31xf32, #tpu.memory_space<vmem>>, %arg2: memref<8x1xi32, #tpu.memory_space<vmem>>, %arg3: memref<31x16xf32, #tpu.memory_space<vmem>>, %arg4: memref<1x1xf32, #tpu.memory_space<vmem>>) attributes {dimension_semantics = [#tpu.dimension_semantics<arbitrary>], iteration_bounds = array<i64: 1>, scalar_prefetch = 0 : i64, scratch_operands = 0 : i64, tpu.core_type = #tpu.core_type<tc>, window_params = [{transform_indices = @transform_0, window_bounds = array<i64: 8, 31>}, {transform_indices = @transform_1, window_bounds = array<i64: 8, 1>}, {pipeline_mode = #tpu.pipeline_mode<synchronous>, transform_indices = @transform_2, window_bounds = array<i64: 31, 16>}, {pipeline_mode = #tpu.pipeline_mode<synchronous>, transform_indices = @transform_3, window_bounds = array<i64: 1, 1>}]} {
    %c0_i32 = arith.constant 0 : i32
    %0 = arith.cmpi eq, %arg0, %c0_i32 : i32
    %1 = arith.extui %0 : i1 to i32
    %c0_i32_0 = arith.constant 0 : i32
    %2 = arith.cmpi ne, %1, %c0_i32_0 : i32
    scf.if %2 {
      %cst_25 = arith.constant 0.000000e+00 : f32
      %67 = vector.broadcast %cst_25 : f32 to vector<1x1xf32>
      %c0_26 = arith.constant 0 : index
      %c0_27 = arith.constant 0 : index
      %68 = vector.load %arg4[%c0_26, %c0_27] : memref<1x1xf32, #tpu.memory_space<vmem>>, vector<1x1xf32>
      tpu.vector_store %arg4[%c0_26, %c0_27], %67 {strides = array<i32>} : memref<1x1xf32, #tpu.memory_space<vmem>>, vector<1x1xf32>,
    } else {
    }
    %c0 = arith.constant 0 : index
    %c0_1 = arith.constant 0 : index
    %3 = vector.load %arg1[%c0, %c0_1] : memref<8x31xf32, #tpu.memory_space<vmem>>, vector<8x31xf32>
    %c0_2 = arith.constant 0 : index
    %c0_3 = arith.constant 0 : index
    %4 = vector.load %arg3[%c0_2, %c0_3] : memref<31x16xf32, #tpu.memory_space<vmem>>, vector<31x16xf32>
    %c0_4 = arith.constant 0 : index
    %c0_5 = arith.constant 0 : index
    %5 = vector.load %arg2[%c0_4, %c0_5] : memref<8x1xi32, #tpu.memory_space<vmem>>, vector<8x1xi32>
    %cst = arith.constant dense<0.000000e+00> : vector<8x16xf32>
    %6 = tpu.matmul %3, %4, %cst {dimension_numbers = #tpu.dot_dimension_numbers<[1], [0], [0], [1], [0, 0, 1, 1], [], []>} : vector<8x31xf32>, vector<31x16xf32>, vector<8x16xf32> -> vector<8x16xf32>
    %7 = arith.mulf %3, %3 : vector<8x31xf32>
    %cst_6 = arith.constant dense<0.000000e+00> : vector<8xf32>
    %8 = vector.multi_reduction <add>, %7, %cst_6 [1] : vector<8x31xf32> to vector<8xf32>
    %9 = vector.shape_cast %8 : vector<8xf32> to vector<8x1xf32>
    %cst_7 = arith.constant 9.99999996E-13 : f32
    %10 = vector.broadcast %cst_7 : f32 to vector<8x1xf32>
    %11 = arith.addf %9, %10 : vector<8x1xf32>
    %12 = math.rsqrt %11 : vector<8x1xf32>
    %13 = arith.mulf %4, %4 : vector<31x16xf32>
    %cst_8 = arith.constant dense<0.000000e+00> : vector<16xf32>
    %14 = vector.multi_reduction <add>, %13, %cst_8 [0] : vector<31x16xf32> to vector<16xf32>
    %15 = vector.shape_cast %14 : vector<16xf32> to vector<1x16xf32>
    %cst_9 = arith.constant 9.99999996E-13 : f32
    %16 = vector.broadcast %cst_9 : f32 to vector<1x16xf32>
    %17 = arith.addf %15, %16 : vector<1x16xf32>
    %18 = math.rsqrt %17 : vector<1x16xf32>
    %19 = vector.broadcast %12 : vector<8x1xf32> to vector<8x16xf32>
    %20 = arith.mulf %6, %19 : vector<8x16xf32>
    %21 = vector.broadcast %18 : vector<1x16xf32> to vector<8x16xf32>
    %22 = arith.mulf %20, %21 : vector<8x16xf32>
    %23 = tpu.iota {dimensions = array<i32: 1>} : vector<8x16xi32>
    %24 = vector.broadcast %5 : vector<8x1xi32> to vector<8x16xi32>
    %25 = arith.cmpi eq, %23, %24 : vector<8x16xi32>
    %26 = arith.extui %25 : vector<8x16xi1> to vector<8x16xi32>
    %27 = arith.sitofp %26 : vector<8x16xi32> to vector<8x16xf32>
    %28 = arith.mulf %22, %27 : vector<8x16xf32>
    %cst_10 = arith.constant dense<0.000000e+00> : vector<8xf32>
    %29 = vector.multi_reduction <add>, %28, %cst_10 [1] : vector<8x16xf32> to vector<8xf32>
    %30 = vector.shape_cast %29 : vector<8xf32> to vector<8x1xf32>
    %cst_11 = arith.constant 6.400000e+01 : f32
    %31 = vector.broadcast %cst_11 : f32 to vector<8x16xf32>
    %32 = arith.mulf %31, %22 : vector<8x16xf32>
    %cst_12 = arith.constant 2.240000e+01 : f32
    %33 = vector.broadcast %cst_12 : f32 to vector<8x16xf32>
    %34 = arith.mulf %33, %27 : vector<8x16xf32>
    %35 = arith.subf %32, %34 : vector<8x16xf32>
    %cst_13 = arith.constant dense<0xFF800000> : vector<8xf32>
    %36 = vector.multi_reduction <maximumf>, %35, %cst_13 [1] : vector<8x16xf32> to vector<8xf32>
    %37 = vector.shape_cast %36 : vector<8xf32> to vector<8x1xf32>
    %38 = vector.broadcast %37 : vector<8x1xf32> to vector<8x16xf32>
    %39 = arith.subf %35, %38 : vector<8x16xf32>
    %40 = math.exp %39 : vector<8x16xf32>
    %cst_14 = arith.constant dense<0.000000e+00> : vector<8xf32>
    %41 = vector.multi_reduction <add>, %40, %cst_14 [1] : vector<8x16xf32> to vector<8xf32>
    %42 = vector.shape_cast %41 : vector<8xf32> to vector<8x1xf32>
    %43 = math.log %42 : vector<8x1xf32>
    %44 = arith.addf %43, %37 : vector<8x1xf32>
    %cst_15 = arith.constant 3.500000e-01 : f32
    %45 = vector.broadcast %cst_15 : f32 to vector<8x1xf32>
    %46 = arith.subf %30, %45 : vector<8x1xf32>
    %cst_16 = arith.constant 6.400000e+01 : f32
    %47 = vector.broadcast %cst_16 : f32 to vector<8x1xf32>
    %48 = arith.mulf %47, %46 : vector<8x1xf32>
    %c8_i32 = arith.constant 8 : i32
    %49 = arith.muli %arg0, %c8_i32 : i32
    %50 = tpu.iota {dimensions = array<i32: 0>} : vector<8x1xi32>
    %51 = vector.broadcast %49 : i32 to vector<8x1xi32>
    %52 = arith.addi %51, %50 : vector<8x1xi32>
    %c8_i32_17 = arith.constant 8 : i32
    %53 = vector.broadcast %c8_i32_17 : i32 to vector<8x1xi32>
    %54 = arith.cmpi slt, %52, %53 : vector<8x1xi32>
    %55 = arith.extui %54 : vector<8x1xi1> to vector<8x1xi32>
    %56 = arith.sitofp %55 : vector<8x1xi32> to vector<8x1xf32>
    %57 = arith.subf %44, %48 : vector<8x1xf32>
    %58 = arith.mulf %57, %56 : vector<8x1xf32>
    %c0_18 = arith.constant 0 : index
    %c0_19 = arith.constant 0 : index
    %59 = vector.load %arg4[%c0_18, %c0_19] : memref<1x1xf32, #tpu.memory_space<vmem>>, vector<1x1xf32>
    %cst_20 = arith.constant dense<0.000000e+00> : vector<1xf32>
    %60 = vector.multi_reduction <add>, %58, %cst_20 [0] : vector<8x1xf32> to vector<1xf32>
    %61 = vector.shape_cast %60 : vector<1xf32> to vector<1x1xf32>
    %62 = arith.addf %59, %61 : vector<1x1xf32>
    %c0_21 = arith.constant 0 : index
    %c0_22 = arith.constant 0 : index
    %63 = vector.load %arg4[%c0_21, %c0_22] : memref<1x1xf32, #tpu.memory_space<vmem>>, vector<1x1xf32>
    tpu.vector_store %arg4[%c0_21, %c0_22], %62 {strides = array<i32>} : memref<1x1xf32, #tpu.memory_space<vmem>>, vector<1x1xf32>,
    %c0_i32_23 = arith.constant 0 : i32
    %64 = arith.cmpi eq, %arg0, %c0_i32_23 : i32
    %65 = arith.extui %64 : i1 to i32
    %c0_i32_24 = arith.constant 0 : i32
    %66 = arith.cmpi ne, %65, %c0_i32_24 : i32
    scf.if %66 {
      %c0_25 = arith.constant 0 : index
      %c0_26 = arith.constant 0 : index
      %67 = vector.load %arg4[%c0_25, %c0_26] : memref<1x1xf32, #tpu.memory_space<vmem>>, vector<1x1xf32>
      %cst_27 = arith.constant 1.250000e-01 : f32
      %68 = vector.broadcast %cst_27 : f32 to vector<1x1xf32>
      %69 = arith.mulf %67, %68 : vector<1x1xf32>
      %c0_28 = arith.constant 0 : index
      %c0_29 = arith.constant 0 : index
      %70 = vector.load %arg4[%c0_28, %c0_29] : memref<1x1xf32, #tpu.memory_space<vmem>>, vector<1x1xf32>
      tpu.vector_store %arg4[%c0_28, %c0_29], %69 {strides = array<i32>} : memref<1x1xf32, #tpu.memory_space<vmem>>, vector<1x1xf32>,
    } else {
    }
    return
  }
  func.func @transform_0(%arg0: i32) -> (i32, i32) {
    %c0_i32 = arith.constant 0 : i32
    %c0_i32_0 = arith.constant 0 : i32
    return %arg0, %c0_i32 : i32, i32
  }
  func.func @transform_1(%arg0: i32) -> (i32, i32) {
    %c0_i32 = arith.constant 0 : i32
    %c0_i32_0 = arith.constant 0 : i32
    return %arg0, %c0_i32 : i32, i32
  }
  func.func @transform_2(%arg0: i32) -> (i32, i32) {
    %c0_i32 = arith.constant 0 : i32
    %c0_i32_0 = arith.constant 0 : i32
    %c0_i32_1 = arith.constant 0 : i32
    return %c0_i32, %c0_i32_0 : i32, i32
  }
  func.func @transform_3(%arg0: i32) -> (i32, i32) {
    %c0_i32 = arith.constant 0 : i32
    %c0_i32_0 = arith.constant 0 : i32
    %c0_i32_1 = arith.constant 0 : i32
    return %c0_i32, %c0_i32_0 : i32, i32
  }
}

</mosaic_0001>

<bundles_post_ra>
// kernel: tpu_custom_call.1
= control target key start
LH: loop header
LB: loop body
LE: loop exit
PB: predicated region body
PF: predicated region fallthrough
CT: control target
= control target key end

     0   :  { %vm31_vm0 = vcmask 1046528   ;;  %v258_v2 = vmov 0.0   ;;  %vm115_vm1 = vcmask 130048   ;;  %vm259_vm2 = vmmov 0   ;;  %s321_s0 = inlined_call_operand.vmem [shape: f32[8,31], index: 0, kind: input, shape index: {}]   ;;  %s322_s1 = inlined_call_operand.vmem [shape: s32[8,1], index: 1, kind: input, shape index: {}]   ;;  %s323_s2 = inlined_call_operand.vmem [shape: f32[31,16], index: 2, kind: input, shape index: {}]   ;;  %s324_s3 = inlined_call_operand.hbm [shape: f32[1,1], index: 3, kind: output, shape index: {}]  }
   0x1   :  { %v25_v0 = vld [vmem:[%s323_s2 + $0x18] sm:$0x7f]  ;;  %v24_v1 = vld [vmem:[%s323_s2 + $0x10] sm:$0xff]  ;;  %212 = vmatprep.subr.mxu0 %v258_v2  ;;  %v23_v5 = vld [vmem:[%s323_s2 + $0x8] sm:$0xff]  ;;  %220 = vmatprep.mubr.msk.f32.mxu0 %vm259_vm2, %v258_v2 }
   0x2   :  { %v114_v3 = vmul.f32 %v25_v0, %v25_v0  ;;  %v113_v4 = vmul.f32 %v24_v1, %v24_v1  ;;  %v22_v6 = vld [vmem:[%s323_s2] sm:$0xff]  ;;  %213 = vmatpush3.msk.msra.mxu0 %vm31_vm0, %v25_v0  ;;  %v112_v8 = vmul.f32 %v23_v5, %v23_v5 }
   0x3   :  { %v21_v7 = vld [vmem:[%s321_s0] sm:$0xff]  ;;  %v111_v9 = vmul.f32 %v22_v6, %v22_v6 }
   0x4   :  { %v105_v10 = vmul.f32 %v21_v7, %v21_v7 }
   0x5   :  { %8 = vsyncpa [#allocation3], 0  ;;  %vm121_vm3 = vcmask 129024   ;;  %214 = vmatprep.subr.mxu0 %v258_v2  ;;  %vm27_vm4 = vcmask 252928   ;;  %v119_v11 = vsel %vm115_vm1, %v113_v4, 0.0  ;;  %v117_v12 = vsel %vm115_vm1, %v112_v8, 0.0 }
   0x6   :  { %215 = vmatpush3.msra.mxu0 %v24_v1  ;;  %v116_v13 = vsel %vm115_vm1, %v111_v9, 0.0  ;;  %v106_v14 = vsel %vm27_vm4, %v105_v10, 0.0  ;;  %v260_v15 = vmov 0   ;;  %v122_v17 = vsel %vm121_vm3, %v114_v3, 0.0  ;;  %v26_v20 = vld [vmem:[%s322_s1] sm:$0xff]  ;;  %s261_s1 = smov [#allocation2]  }
   0x7   :  { %227 = vset.pattern.permute.xlu0 %v260_v15  ;;  %216 = vmatprep.subr.mxu0 %v258_v2  ;;  %v118_v16 = vadd.f32 %v117_v12, %v116_v13  ;;  %v134_v30 = vlaneseq  ;;  %vm19_vm6 = vcmask 0   ;;  %s195_s22 = sshll.u32 %s261_s1, 4  ;;  %s196_s22 = int_to_ptr.vmem [resolvable:$true] %s195_s22 }
   0x8   :  { %107 = vadd.xlane.f32.xlu0 %v106_v14  ;;  %217 = vmatpush3.msra.mxu0 %v23_v5  ;;  %20 = vst.msk [vmem:[#allocation2] sm:$0x1] %vm19_vm6, %v258_v2  ;;  %s236_s23 = scalar_lea.vmem %s196_s22, 16  ;;  %s240_s24 = scalar_lea.vmem %s196_s22, 32 }
   0x9   :  { %218 = vmatprep.subr.mxu0 %v258_v2  ;;  %v120_v18 = vadd.f32 %v119_v11, %v118_v16  ;;  %v135_v31 = vand.u32 127, %v134_v30  ;;  %p237_p0 = scmp.ne.s32.totalorder %s196_s22, %s236_s23  ;;  %p241_p1 = scmp.lt.s32.totalorder %s196_s22, %s196_s22 }
   0xa   :  { %219 = vmatpush3.msra.mxu0 %v22_v6  ;;  %p242_p2 = scmp.lt.s32.totalorder %s240_s24, %s236_s23 }
   0xb   :  { %v123_v19 = vadd.f32 %v122_v17, %v120_v18  ;;  %221 = vmatmul.mubr.msk.f32.vlgmr.msra.gmra.mxu0 %vm27_vm4, %v21_v7 }
   0xc   :  { %p243_p3 = por %p242_p2, %p241_p1 }
   0xd   :  { %v124_v21 = vrot.slane %v123_v19, 4 }
   0xe   :  { %p244_p4 = pnand %p243_p3, %p237_p0 }
   0xf   :  { %v125_v22 = vadd.f32 %v124_v21, %v123_v19  ;;  %v173_v0 = vld [vmem:[#allocation2] sm:$0x1] }
  0x11   :  { %v126_v23 = vrot.slane %v125_v22, 2 }
  0x13   :  { %v127_v24 = vadd.f32 %v126_v23, %v125_v22 }
  0x15   :  { %v128_v25 = vrot.slane %v127_v24, 1 }
  0x17   :  { %v129_v27 = vadd.f32 %v128_v25, %v127_v24 }
  0x19   :  { %v130_v29 = vadd.f32 1e-12, %v129_v27 }
  0x1e   :  { %137 = vperm.xlu0 %227, %v26_v20  }
  0x91   :  { %v108_v26 = vpop.xlane.xlu0 %107 }
  0x92   :  { %v109_v28 = vadd.f32 1e-12, %v108_v26 }
  0x94   :  { %228 = vrsqrt.f32 %v109_v28 }
  0x95   :  { %230 = vrsqrt.f32 %v130_v29 }
  0x99   :  { %v138_v32 = vpop.permute.xlu0 %137 }
  0x9a   :  { %vm139_vm5 = vcmp.eq.s32.totalorder %v135_v31, %v138_v32 }
  0x9b   :  { %v205_v36 = vsel %vm139_vm5, 1.0, %v258_v2 }
  0x9c   :  { %v147_v40 = vmul.f32 22.4, %v205_v36 }
  0xa1   :  { %v229_v33 = vpop.eup %228 }
  0xa2   :  { %v231_v34 = vpop.eup %230 }
  0xcb   :  { %v101_v35 = vpop.f32.mrf.mxu0 }
  0xcc   :  { %v132_v37 = vmul.f32 %v229_v33, %v101_v35 }
  0xcd   :  { %v222_v38 = vpop.f32.mrf.mxu0 }
  0xce   :  { %v133_v39 = vmul.f32 %v231_v34, %v132_v37 }
  0xd0   :  { %v146_v41 = vmul.f32 64.0, %v133_v39  ;;  %v142_v42 = vmul.f32 %v205_v36, %v133_v39 }
  0xd2   :  { %v148_v43 = vsub.f32 %v146_v41, %v147_v40  ;;  %v143_v50 = vsel %vm115_vm1, %v142_v42, 0.0 }
  0xd4   :  { %v149_v44 = vsel %vm115_vm1, %v148_v43, -inf }
  0xd5   :  { %150 = vmax.xlane.f32.xlu1 %v149_v44 }
 0x15e   :  { %v151_v45 = vpop.xlane.xlu1 %150 }
 0x15f   :  { %v152_v46 = vsub.f32 %v148_v43, %v151_v45 }
 0x161   :  { %v153_v47 = vmul.f32 1.442695, %v152_v46 }
 0x163   :  { %232 = vpow2.f32 %v153_v47 }
 0x170   :  { %v233_v48 = vpop.eup %232 }
 0x171   :  { %v155_v49 = vsel %vm115_vm1, %v233_v48, 0.0 }
 0x172   :  { %156 = vadd.xlane.f32.xlu1 %v155_v49 }
 0x176   :  { %144 = vadd.xlane.f32.xlu1 %v143_v50 }
 0x1fb   :  { %v157_v51 = vpop.xlane.xlu1 %156 }
 0x1fc   :  { %234 = vlog2.f32 %v157_v51 }
 0x1ff   :  { %v145_v52 = vpop.xlane.xlu1 %144 }
 0x200   :  { %v206_v53 = vadd.f32 -0.35, %v145_v52 }
 0x202   :  { %v162_v57 = vmul.f32 64.0, %v206_v53 }
 0x209   :  { %v235_v54 = vpop.eup %234 }
 0x20a   :  { %v159_v55 = vmul.f32 0.6931472, %v235_v54 }
 0x20c   :  { %v160_v56 = vadd.f32 %v159_v55, %v151_v45 }
 0x20e   :  { %v171_v58 = vsub.f32 %v160_v56, %v162_v57 }
 0x210   :  { %v174_v59 = vrot.slane %v171_v58, 4 }
 0x212   :  { %v175_v60 = vadd.f32 %v174_v59, %v171_v58 }
 0x214   :  { %v176_v61 = vrot.slane %v175_v60, 2 }
 0x216   :  { %v177_v62 = vadd.f32 %v176_v61, %v175_v60 }
 0x218   :  { %v178_v63 = vrot.slane %v177_v62, 1 }
 0x21a   :  { %v179_v1 = vadd.f32 %v178_v63, %v177_v62 }
 0x21c   :  { %v180_v3 = vadd.f32 %v179_v1, %v173_v0 }
 0x21e   :  { %182 = vst.msk [vmem:[#allocation2] sm:$0x1] %vm19_vm6, %v180_v3 }
 0x225   :  { %v186_v2 = vld [vmem:[#allocation2] sm:$0x1] }
 0x226   :  { %v187_v4 = vmul.f32 0.125, %v186_v2 }
 0x228   :  { %188 = vst.msk [vmem:[#allocation2] sm:$0x1] %vm19_vm6, %v187_v4 }
 0x229   :  { %247 = shalt.err (!%p244_p4)
}
 0x22a   :  { %198 = dma.vmem_to_hbm [thread:$0]  %s196_s22, 16, %s324_s3, [#allocation3]  }
 0x22b   :  { %256 = dma.done.wait [#allocation3], 16  }
 0x22c   :  { %257 = vsyncadd [#allocation3], 4294967280 }
 0x22d   :  { %202 = vsyncpa [#allocation3], 1 }

</bundles_post_ra>
